<compile_context>
chip_gen: v5e
topology: v5e:2x2
jax: 0.10.0
libtpu: 0.0.40
codegen_flags: <defaults>
</compile_context>

<pallas_src>
import functools

import jax
import jax.numpy as jnp
from jax.experimental import pallas as pl
from jax.experimental.pallas import tpu as pltpu

# Tile targets (MXU-friendly; sized so double-buffered bf16 tiles stay well under the
# 32 MiB scoped-VMEM default on every generation, incl. v7x's 64 MiB physical VMEM).
DEFAULT_TM = 256
DEFAULT_TN = 512
DEFAULT_TK = 512
DEFAULT_TQ = 256          # attention q / kv block (along tokens)
DEFAULT_TT = 256          # token tile for row-wise (RMSNorm) kernels
VMEM_LIMIT = 32 * 1024 * 1024

_MM_PARAMS = pltpu.CompilerParams(
    dimension_semantics=("parallel", "parallel", "arbitrary"),
    vmem_limit_bytes=VMEM_LIMIT)
_ROW_PARAMS = pltpu.CompilerParams(
    dimension_semantics=("parallel",),
    vmem_limit_bytes=VMEM_LIMIT)


def _pick_tile(dim, target, align):
    """Largest tile <= target that divides `dim` and is a multiple of `align`.
    Falls back to the full dim (always a legal BlockSpec block size)."""
    t = min(target, dim)
    t = (t // align) * align
    while t >= align:
        if dim % t == 0:
            return t
        t -= align
    return dim


# ------------------------------ tiled matmul kernels ------------------------------

def _mm_kernel(x_ref, w_ref, o_ref, acc_ref):
    @pl.when(pl.program_id(2) == 0)
    def _init():
        acc_ref[...] = jnp.zeros_like(acc_ref)

    acc_ref[...] += jnp.dot(x_ref[...], w_ref[...],
                            preferred_element_type=jnp.float32)

    @pl.when(pl.program_id(2) == pl.num_programs(2) - 1)
    def _done():
        o_ref[...] = acc_ref[...].astype(o_ref.dtype)


def matmul(x, w):
    """x: [M, K] @ w: [K, N] -> [M, N], K-tiled with f32 accumulation."""
    M, K = x.shape
    K2, N = w.shape
    assert K == K2
    tm = _pick_tile(M, DEFAULT_TM, 8)
    tn = _pick_tile(N, DEFAULT_TN, 128)
    tk = _pick_tile(K, DEFAULT_TK, 128)
    return pl.pallas_call(
        _mm_kernel,
        out_shape=jax.ShapeDtypeStruct((M, N), x.dtype),
        grid=(M // tm, N // tn, K // tk),
        in_specs=[
            pl.BlockSpec((tm, tk), lambda i, j, k: (i, k)),
            pl.BlockSpec((tk, tn), lambda i, j, k: (k, j)),
        ],
        out_specs=pl.BlockSpec((tm, tn), lambda i, j, k: (i, j)),
        scratch_shapes=[pltpu.VMEM((tm, tn), jnp.float32)],
        compiler_params=_MM_PARAMS,
    )(x, w)


def _mm_add_kernel(x_ref, w_ref, r_ref, o_ref, acc_ref):
    @pl.when(pl.program_id(2) == 0)
    def _init():
        acc_ref[...] = jnp.zeros_like(acc_ref)

    acc_ref[...] += jnp.dot(x_ref[...], w_ref[...],
                            preferred_element_type=jnp.float32)

    @pl.when(pl.program_id(2) == pl.num_programs(2) - 1)
    def _done():
        o_ref[...] = (acc_ref[...] + r_ref[...].astype(jnp.float32)).astype(o_ref.dtype)


def matmul_add(x, w, res):
    """(x @ w) + res, with the residual add fused into the matmul writeback."""
    M, K = x.shape
    K2, N = w.shape
    assert K == K2 and res.shape == (M, N)
    tm = _pick_tile(M, DEFAULT_TM, 8)
    tn = _pick_tile(N, DEFAULT_TN, 128)
    tk = _pick_tile(K, DEFAULT_TK, 128)
    return pl.pallas_call(
        _mm_add_kernel,
        out_shape=jax.ShapeDtypeStruct((M, N), x.dtype),
        grid=(M // tm, N // tn, K // tk),
        in_specs=[
            pl.BlockSpec((tm, tk), lambda i, j, k: (i, k)),
            pl.BlockSpec((tk, tn), lambda i, j, k: (k, j)),
            pl.BlockSpec((tm, tn), lambda i, j, k: (i, j)),
        ],
        out_specs=pl.BlockSpec((tm, tn), lambda i, j, k: (i, j)),
        scratch_shapes=[pltpu.VMEM((tm, tn), jnp.float32)],
        compiler_params=_MM_PARAMS,
    )(x, w, res)


def _gate_up_silu_kernel(x_ref, w1_ref, w3_ref, o_ref, acc_g_ref, acc_u_ref):
    @pl.when(pl.program_id(2) == 0)
    def _init():
        acc_g_ref[...] = jnp.zeros_like(acc_g_ref)
        acc_u_ref[...] = jnp.zeros_like(acc_u_ref)

    x = x_ref[...]
    acc_g_ref[...] += jnp.dot(x, w1_ref[...], preferred_element_type=jnp.float32)
    acc_u_ref[...] += jnp.dot(x, w3_ref[...], preferred_element_type=jnp.float32)

    @pl.when(pl.program_id(2) == pl.num_programs(2) - 1)
    def _done():
        g = acc_g_ref[...]
        o_ref[...] = (g * jax.nn.sigmoid(g) * acc_u_ref[...]).astype(o_ref.dtype)


def gate_up_silu_matmul(x, w1, w3):
    """Fused gate/up projection + SiluAndMul: silu(x@w1) * (x@w3)."""
    M, K = x.shape
    K2, N = w1.shape
    assert K == K2 and w3.shape == (K, N)
    tm = _pick_tile(M, DEFAULT_TM, 8)
    tn = _pick_tile(N, DEFAULT_TN, 128)
    tk = _pick_tile(K, DEFAULT_TK, 128)
    return pl.pallas_call(
        _gate_up_silu_kernel,
        out_shape=jax.ShapeDtypeStruct((M, N), x.dtype),
        grid=(M // tm, N // tn, K // tk),
        in_specs=[
            pl.BlockSpec((tm, tk), lambda i, j, k: (i, k)),
            pl.BlockSpec((tk, tn), lambda i, j, k: (k, j)),
            pl.BlockSpec((tk, tn), lambda i, j, k: (k, j)),
        ],
        out_specs=pl.BlockSpec((tm, tn), lambda i, j, k: (i, j)),
        scratch_shapes=[pltpu.VMEM((tm, tn), jnp.float32),
                        pltpu.VMEM((tm, tn), jnp.float32)],
        compiler_params=_MM_PARAMS,
    )(x, w1, w3)


# ------------------------------ RMSNorm (token-tiled) ------------------------------

def _rmsnorm_kernel(x_ref, w_ref, o_ref, *, eps):
    x = x_ref[...].astype(jnp.float32)
    var = jnp.mean(x * x, axis=-1, keepdims=True)
    o_ref[...] = (x * jax.lax.rsqrt(var + eps)
                  * w_ref[...].astype(jnp.float32)).astype(o_ref.dtype)


def rmsnorm(x, w, eps):
    T, H = x.shape
    tt = _pick_tile(T, DEFAULT_TT, 8)
    return pl.pallas_call(
        functools.partial(_rmsnorm_kernel, eps=eps),
        out_shape=jax.ShapeDtypeStruct((T, H), x.dtype),
        grid=(T // tt,),
        in_specs=[
            pl.BlockSpec((tt, H), lambda i: (i, 0)),
            pl.BlockSpec((1, H), lambda i: (0, 0)),
        ],
        out_specs=pl.BlockSpec((tt, H), lambda i: (i, 0)),
        compiler_params=_ROW_PARAMS,
    )(x, w.reshape(1, H))


# ------------------------------ flash attention (RoPE + GQA fused) ------------------------------

def _rope_apply(x, cos_full, sin_signed, half):
    """Neox-style RoPE on an f32 (t, head_dim) tile.

    cos_full   = [cos | cos]      (t, head_dim)
    sin_signed = [-sin | sin]     (t, head_dim)
    out = x * cos_full + roll(x, head_dim/2) * sin_signed
    (roll by half a vreg-lane group goes to the XLU slot; no lane concats needed).
    """
    rolled = pltpu.roll(x, shift=half, axis=1)
    return x * cos_full + rolled * sin_signed


def _flash_attn_kernel(q_ref, k_ref, v_ref, cq_ref, sq_ref, ck_ref, sk_ref,
                       o_ref, qr_ref, m_ref, l_ref, acc_ref,
                       *, scale, block_q, block_k, half):
    qi = pl.program_id(1)
    ki = pl.program_id(2)

    @pl.when(ki == 0)
    def _init():
        # RoPE the q tile once per (head, q-block), folding in the softmax scale.
        q = q_ref[...].astype(jnp.float32)
        qr_ref[...] = (_rope_apply(q, cq_ref[...], sq_ref[...], half) * scale
                       ).astype(qr_ref.dtype)
        m_ref[...] = jnp.full_like(m_ref, -jnp.inf)
        l_ref[...] = jnp.zeros_like(l_ref)
        acc_ref[...] = jnp.zeros_like(acc_ref)

    @pl.when(ki <= qi)                       # causal: skip fully-masked kv blocks
    def _compute():
        k = _rope_apply(k_ref[...].astype(jnp.float32), ck_ref[...], sk_ref[...], half)
        k = k.astype(k_ref.dtype)
        # s = q @ k^T on bf16 operands, f32 accumulation.
        s = jax.lax.dot_general(qr_ref[...], k, (((1,), (1,)), ((), ())),
                                preferred_element_type=jnp.float32)
        row = qi * block_q + jax.lax.broadcasted_iota(jnp.int32, s.shape, 0)
        col = ki * block_k + jax.lax.broadcasted_iota(jnp.int32, s.shape, 1)
        s = jnp.where(col <= row, s, -jnp.inf)

        m_prev = m_ref[...]
        m_new = jnp.maximum(m_prev, jnp.max(s, axis=-1, keepdims=True))
        alpha = jnp.exp(m_prev - m_new)
        p = jnp.exp(s - m_new)
        l_ref[...] = alpha * l_ref[...] + jnp.sum(p, axis=-1, keepdims=True)
        acc_ref[...] = alpha * acc_ref[...] + jnp.dot(
            p.astype(v_ref.dtype), v_ref[...], preferred_element_type=jnp.float32)
        m_ref[...] = m_new

    @pl.when(ki == qi)                       # last contributing kv block -> finalize
    def _finalize():
        o_ref[...] = (acc_ref[...] *
                      pl.reciprocal(l_ref[...], approx=True)).astype(o_ref.dtype)


def flash_attention(qkv, cos_full, sin_signed, *, num_heads, num_kv_heads,
                    head_dim, scale):
    """Causal GQA attention reading q/k/v straight from the fused qkv matrix.

    qkv: [T, (num_heads + 2*num_kv_heads) * head_dim]  (q | k | v column blocks)
    cos_full / sin_signed: [T, head_dim] f32 RoPE tables (lane-dense).
    Returns [T, num_heads * head_dim] in qkv.dtype (lane-dense head slabs).
    """
    T = qkv.shape[0]
    rep = num_heads // num_kv_heads
    k_off = num_heads                         # column-block offset of k inside qkv
    v_off = num_heads + num_kv_heads          # column-block offset of v inside qkv
    half = head_dim // 2
    tq = _pick_tile(T, DEFAULT_TQ, 8)
    nq = T // tq

    # GQA sharing + causal DMA clamping happen entirely in the index maps (zero copy).
    # Clamping keeps the block index constant for ki > qi, so Pallas elides the DMA.
    q_map = lambda h, qi, ki: (qi, h)
    k_map = lambda h, qi, ki: (jnp.minimum(ki, qi), k_off + h // rep)
    v_map = lambda h, qi, ki: (jnp.minimum(ki, qi), v_off + h // rep)
    cq_map = lambda h, qi, ki: (qi, 0)
    ck_map = lambda h, qi, ki: (jnp.minimum(ki, qi), 0)

    kernel = functools.partial(_flash_attn_kernel, scale=scale,
                               block_q=tq, block_k=tq, half=half)
    return pl.pallas_call(
        kernel,
        out_shape=jax.ShapeDtypeStruct((T, num_heads * head_dim), qkv.dtype),
        grid=(num_heads, nq, nq),
        in_specs=[
            pl.BlockSpec((tq, head_dim), q_map),
            pl.BlockSpec((tq, head_dim), k_map),
            pl.BlockSpec((tq, head_dim), v_map),
            pl.BlockSpec((tq, head_dim), cq_map),
            pl.BlockSpec((tq, head_dim), cq_map),
            pl.BlockSpec((tq, head_dim), ck_map),
            pl.BlockSpec((tq, head_dim), ck_map),
        ],
        out_specs=pl.BlockSpec((tq, head_dim), lambda h, qi, ki: (qi, h)),
        scratch_shapes=[
            pltpu.VMEM((tq, head_dim), qkv.dtype),   # roped+scaled q tile
            pltpu.VMEM((tq, 1), jnp.float32),        # running max
            pltpu.VMEM((tq, 1), jnp.float32),        # running sum
            pltpu.VMEM((tq, head_dim), jnp.float32), # output accumulator
        ],
        compiler_params=_MM_PARAMS,
    )(qkv, qkv, qkv, cos_full, sin_signed, cos_full, sin_signed)


# ------------------------------ model (glue + kernels) ------------------------------

def make_params(key, cfg, dtype=jnp.bfloat16):
    H = cfg["hidden_size"]
    I = cfg["intermediate_size"]
    NH, NKV, HD = cfg["num_heads"], cfg["num_kv_heads"], cfg["head_dim"]
    q_size, kv_size = NH * HD, NKV * HD
    V = cfg["vocab_size"]

    def init(k, shape):
        return (jax.random.normal(k, shape, dtype=jnp.float32) * 0.02).astype(dtype)

    keys = jax.random.split(key, 1 + 5 * cfg["num_layers"])
    params = {"tok_embeddings": init(keys[0], (V, H)), "layers": []}
    ki = 1
    for _ in range(cfg["num_layers"]):
        layer = {
            "wqkv": init(keys[ki], (H, q_size + 2 * kv_size)),
            "wo": init(keys[ki + 1], (q_size, H)),
            "w1": init(keys[ki + 2], (H, I)),   # gate proj
            "w3": init(keys[ki + 3], (H, I)),   # up proj
            "w2": init(keys[ki + 4], (I, H)),
            "attention_norm": jnp.ones((H,), dtype),
            "ffn_norm": jnp.ones((H,), dtype),
        }
        ki += 5
        params["layers"].append(layer)
    params["norm"] = jnp.ones((H,), dtype)
    return params


def rope_tables_half(positions, head_dim, theta):
    half = head_dim // 2
    inv_freq = 1.0 / (theta ** (jnp.arange(0, half, dtype=jnp.float32) * 2.0 / head_dim))
    freqs = positions.astype(jnp.float32)[:, None] * inv_freq[None, :]   # [T, half]
    return jnp.cos(freqs), jnp.sin(freqs)


def rope_tables_full(positions, head_dim, theta):
    """Lane-dense tables for the kernel: cos_full=[cos|cos], sin_signed=[-sin|sin]."""
    cos, sin = rope_tables_half(positions, head_dim, theta)
    cos_full = jnp.concatenate([cos, cos], axis=-1)
    sin_signed = jnp.concatenate([-sin, sin], axis=-1)
    return cos_full, sin_signed


def internlm2_forward(params, cfg, input_ids, positions):
    NH, NKV, HD = cfg["num_heads"], cfg["num_kv_heads"], cfg["head_dim"]
    eps = cfg["rms_norm_eps"]
    scale = HD ** (-0.5)

    cos_full, sin_signed = rope_tables_full(positions, HD, cfg["rope_theta"])

    hidden = params["tok_embeddings"][input_ids]          # [T, H] gather (glue)
    residual = hidden                                      # running residual stream
    for layer in params["layers"]:
        # ---- attention block ----
        h = rmsnorm(residual, layer["attention_norm"], eps)
        qkv = matmul(h, layer["wqkv"])                     # [T, (NH+2*NKV)*HD]
        attn = flash_attention(qkv, cos_full, sin_signed, num_heads=NH,
                               num_kv_heads=NKV, head_dim=HD, scale=scale)
        residual = matmul_add(attn, layer["wo"], residual)  # wo proj + residual add

        # ---- MLP block ----
        h = rmsnorm(residual, layer["ffn_norm"], eps)
        act = gate_up_silu_matmul(h, layer["w1"], layer["w3"])   # silu(w1 h) * (w3 h)
        residual = matmul_add(act, layer["w2"], residual)        # w2 proj + residual add

    return rmsnorm(residual, params["norm"], eps)


# ------------------------------ pure-JAX f32 reference ------------------------------

def reference_forward(params, cfg, input_ids, positions):
    f32 = lambda a: a.astype(jnp.float32)
    NH, NKV, HD = cfg["num_heads"], cfg["num_kv_heads"], cfg["head_dim"]
    q_size, kv_size = NH * HD, NKV * HD
    eps = cfg["rms_norm_eps"]
    scale = HD ** (-0.5)
    T = input_ids.shape[0]
    cos, sin = rope_tables_half(positions, HD, cfg["rope_theta"])

    def rms(x, w):
        var = jnp.mean(x * x, axis=-1, keepdims=True)
        return x * jax.lax.rsqrt(var + eps) * f32(w)

    def rope(x):  # [T, nh, hd]
        half = HD // 2
        x1, x2 = x[..., :half], x[..., half:]
        c, s = cos[:, None, :], sin[:, None, :]
        return jnp.concatenate([x1 * c - x2 * s, x2 * c + x1 * s], axis=-1)

    hidden = f32(params["tok_embeddings"])[input_ids]
    residual = hidden
    mask = jnp.tril(jnp.ones((T, T), bool))
    for layer in params["layers"]:
        h = rms(residual, layer["attention_norm"])
        qkv = h @ f32(layer["wqkv"])
        q = rope(qkv[:, :q_size].reshape(T, NH, HD))
        k = rope(qkv[:, q_size:q_size + kv_size].reshape(T, NKV, HD))
        v = qkv[:, q_size + kv_size:].reshape(T, NKV, HD)
        rep = NH // NKV
        k = jnp.repeat(k, rep, axis=1)
        v = jnp.repeat(v, rep, axis=1)
        s = jnp.einsum("qhd,khd->hqk", q, k) * scale
        s = jnp.where(mask[None], s, -jnp.inf)
        p = jax.nn.softmax(s, axis=-1)
        attn = jnp.einsum("hqk,khd->qhd", p, v).reshape(T, NH * HD)
        residual = attn @ f32(layer["wo"]) + residual
        h = rms(residual, layer["ffn_norm"])
        act = jax.nn.silu(h @ f32(layer["w1"])) * (h @ f32(layer["w3"]))
        residual = act @ f32(layer["w2"]) + residual
    return rms(residual, params["norm"])


# ------------------------------ main ------------------------------

if __name__ == "__main__":
    # Small config, but with head_dim=128 so attention blocks are lane-dense like the real model.
    cfg = dict(
        vocab_size=128,
        hidden_size=256,
        num_heads=2,
        num_kv_heads=1,          # GQA: 2 query heads share 1 kv head
        head_dim=128,
        intermediate_size=512,
        num_layers=2,
        rms_norm_eps=1e-6,
        rope_theta=10000.0,
    )
    T = 16
    key = jax.random.PRNGKey(0)
    kp, kid = jax.random.split(key)
    params = make_params(kp, cfg, dtype=jnp.bfloat16)
    input_ids = jax.random.randint(kid, (T,), 0, cfg["vocab_size"])
    positions = jnp.arange(T, dtype=jnp.int32)

    out = internlm2_forward(params, cfg, input_ids, positions)
    out = jax.block_until_ready(out)
    assert out.shape == (T, cfg["hidden_size"])
    out_f32 = out.astype(jnp.float32)
    assert bool(jnp.all(jnp.isfinite(out_f32)))

    ref = reference_forward(params, cfg, input_ids, positions)
    max_err = float(jnp.max(jnp.abs(out_f32 - ref)))
    assert bool(jnp.allclose(out_f32, ref, atol=8e-2, rtol=8e-2)), f"max err {max_err}"
    print("KERNEL_OK")
</pallas_src>

<mosaic_0001>
module attributes {stable_mosaic.version = 11 : i64} {
  func.func @_rmsnorm_kernel(%arg0: i32, %arg1: memref<16x256xbf16, #tpu.memory_space<vmem>>, %arg2: memref<1x256xbf16, #tpu.memory_space<vmem>>, %arg3: memref<16x256xbf16, #tpu.memory_space<vmem>>) attributes {dimension_semantics = [#tpu.dimension_semantics<parallel>], iteration_bounds = array<i64: 1>, scalar_prefetch = 0 : i64, scratch_operands = 0 : i64, tpu.core_type = #tpu.core_type<tc>, window_params = [{transform_indices = @transform_0, window_bounds = array<i64: 16, 256>}, {pipeline_mode = #tpu.pipeline_mode<synchronous>, transform_indices = @transform_1, window_bounds = array<i64: 1, 256>}, {transform_indices = @transform_2, window_bounds = array<i64: 16, 256>}]} {
    %c0 = arith.constant 0 : index
    %c0_0 = arith.constant 0 : index
    %0 = vector.load %arg1[%c0, %c0_0] : memref<16x256xbf16, #tpu.memory_space<vmem>>, vector<16x256xbf16>
    %1 = arith.extf %0 : vector<16x256xbf16> to vector<16x256xf32>
    %2 = arith.mulf %1, %1 : vector<16x256xf32>
    %cst = arith.constant dense<0.000000e+00> : vector<16xf32>
    %3 = vector.multi_reduction <add>, %2, %cst [1] : vector<16x256xf32> to vector<16xf32>
    %4 = vector.shape_cast %3 : vector<16xf32> to vector<16x1xf32>
    %cst_1 = arith.constant 2.560000e+02 : f32
    %5 = vector.broadcast %cst_1 : f32 to vector<16x1xf32>
    %6 = arith.divf %4, %5 : vector<16x1xf32>
    %cst_2 = arith.constant 9.99999997E-7 : f32
    %7 = vector.broadcast %cst_2 : f32 to vector<16x1xf32>
    %8 = arith.addf %6, %7 : vector<16x1xf32>
    %9 = math.rsqrt %8 : vector<16x1xf32>
    %10 = vector.broadcast %9 : vector<16x1xf32> to vector<16x256xf32>
    %11 = arith.mulf %1, %10 : vector<16x256xf32>
    %c0_3 = arith.constant 0 : index
    %c0_4 = arith.constant 0 : index
    %12 = vector.load %arg2[%c0_3, %c0_4] : memref<1x256xbf16, #tpu.memory_space<vmem>>, vector<1x256xbf16>
    %13 = arith.extf %12 : vector<1x256xbf16> to vector<1x256xf32>
    %14 = vector.broadcast %13 : vector<1x256xf32> to vector<16x256xf32>
    %15 = arith.mulf %11, %14 : vector<16x256xf32>
    %16 = arith.truncf %15 : vector<16x256xf32> to vector<16x256xbf16>
    %c0_5 = arith.constant 0 : index
    %c0_6 = arith.constant 0 : index
    %17 = vector.load %arg3[%c0_5, %c0_6] : memref<16x256xbf16, #tpu.memory_space<vmem>>, vector<16x256xbf16>
    tpu.vector_store %arg3[%c0_5, %c0_6], %16 {strides = array<i32>} : memref<16x256xbf16, #tpu.memory_space<vmem>>, vector<16x256xbf16>,
    return
  }
  func.func @transform_0(%arg0: i32) -> (i32, i32) {
    %c0_i32 = arith.constant 0 : i32
    %c0_i32_0 = arith.constant 0 : i32
    return %arg0, %c0_i32 : i32, i32
  }
  func.func @transform_1(%arg0: i32) -> (i32, i32) {
    %c0_i32 = arith.constant 0 : i32
    %c0_i32_0 = arith.constant 0 : i32
    %c0_i32_1 = arith.constant 0 : i32
    return %c0_i32, %c0_i32_0 : i32, i32
  }
  func.func @transform_2(%arg0: i32) -> (i32, i32) {
    %c0_i32 = arith.constant 0 : i32
    %c0_i32_0 = arith.constant 0 : i32
    return %arg0, %c0_i32 : i32, i32
  }
}

</mosaic_0001>

<bundles_post_ra>
// kernel: tpu_custom_call.1
= control target key start
LH: loop header
LB: loop body
LE: loop exit
PB: predicated region body
PF: predicated region fallthrough
CT: control target
= control target key end

     0   :  { %7 = vsyncpa [#allocation3], 0  ;;  %s256_s0 = inlined_call_operand.hbm [shape: bf16[16,256], index: 0, kind: input, shape index: {}]   ;;  %s257_s1 = inlined_call_operand.hbm [shape: bf16[1,256], index: 1, kind: input, shape index: {}]   ;;  %s258_s2 = inlined_call_operand.hbm [shape: bf16[16,256], index: 2, kind: output, shape index: {}]  }
   0x1   :  { %8 = vsyncpa [#allocation6], 0 }
   0x2   :  { %9 = vsyncpa [#allocation4], 0  ;;  %s14_s11 = sshll.u32 %s256_s0, 4  ;;  %s220_s12 = smov [#allocation2]   ;;  %s15_s11 = int_to_ptr.hbm [resolvable:$true] %s14_s11 }
   0x3   :  { %s16_s13 = sshll.u32 %s220_s12, 4  ;;  %s28_s16 = sshll.u32 %s257_s1, 4  ;;  %s17_s13 = int_to_ptr.vmem [resolvable:$true] %s16_s13  ;;  %s29_s16 = int_to_ptr.hbm [resolvable:$true] %s28_s16 }
   0x4   :  { %s221_s17 = smov 128   ;;  %s222_s18 = smov 8  }
   0x5   :  { %22 = dma.hbm_to_vmem [thread:$0]  %s15_s11, 256, %s17_s13, [#allocation3], %s221_s17, %s221_s17, %s222_s18  }
   0x6   :  { %s223_s19 = smov [#allocation5]  }
   0x7   :  { %s30_s20 = sshll.u32 %s223_s19, 4  ;;  %s31_s20 = int_to_ptr.vmem [resolvable:$true] %s30_s20 }
   0x8   :  { %33 = dma.hbm_to_vmem [thread:$0]  %s29_s16, 32, %s31_s20, [#allocation6]  }
   0x9   :  { %214 = dma.done.wait [#allocation3], 256  }
   0xa   :  { %215 = vsyncadd [#allocation3], 4294967040 }
   0xb   :  { %216 = dma.done.wait [#allocation6], 32  }
   0xc   :  { %217 = vsyncadd [#allocation6], 4294967264  ;;  %v42_v0 = vld [vmem:[#allocation2] sm:$0xff]  ;;  %v43_v1 = vld [vmem:[#allocation2 + $0x8] sm:$0xff]  ;;  %v224_v12 = vmov 256.0   ;;  %s225_s0 = smov [#allocation7]  }
   0xd   :  { %v44_v2 = vunpack.c.l.bf16 %v42_v0  ;;  %v45_v3 = vunpack.c.h.bf16 %v42_v0  ;;  %v46_v6 = vunpack.c.l.bf16 %v43_v1  ;;  %v47_v7 = vunpack.c.h.bf16 %v43_v1  ;;  %v93_v24 = vld [vmem:[#allocation5] sm:$0x3]  ;;  %s114_s1 = sshll.u32 %s225_s0, 4  ;;  %s116_s23 = sshll.u32 %s258_s2, 4  ;;  %s115_s1 = int_to_ptr.vmem [resolvable:$true] %s114_s1  ;;  %s117_s23 = int_to_ptr.hbm [resolvable:$true] %s116_s23 }
   0xe   :  { %136 = vrcp.f32 %v224_v12  ;;  %v94_v28 = vunpack.c.l.bf16 %v93_v24 }
   0xf   :  { %v48_v4 = vmul.f32 %v44_v2, %v44_v2  ;;  %v49_v5 = vmul.f32 %v45_v3, %v45_v3  ;;  %v50_v9 = vmul.f32 %v46_v6, %v46_v6  ;;  %v51_v10 = vmul.f32 %v47_v7, %v47_v7 }
  0x10   :  { %v96_v31 = vperm.slane %v94_v28, 0  ;;  %v97_v32 = vperm.slane %v94_v28, 2 }
  0x11   :  { %v52_v8 = vadd.f32 %v49_v5, %v48_v4  ;;  %v55_v11 = vadd.f32 %v51_v10, %v50_v9 }
  0x12   :  { %v100_v37 = vperm.slane %v96_v31, 0  ;;  %v101_v38 = vperm.slane %v97_v32, 0 }
  0x13   :  { %53 = vadd.xlane.f32.xlu0 %v52_v8 }
  0x14   :  { %v137_v13 = vpop.eup %136 }
  0x15   :  { %v59_v14 = vmul.f32 256.0, %v137_v13  ;;  %vm63_vm0 = vweird.f32 %v137_v13 }
  0x17   :  { %v60_v15 = vsub.f32 1.0, %v59_v14 }
  0x19   :  { %v61_v16 = vmul.f32 %v137_v13, %v60_v15 }
  0x1b   :  { %56 = vadd.xlane.f32.xlu0 %v55_v11  ;;  %v62_v17 = vadd.f32 %v137_v13, %v61_v16 }
  0x1d   :  { %v64_v18 = vsel %vm63_vm0, %v137_v13, %v62_v17 }
  0x86   :  { %v54_v19 = vpop.xlane.xlu0 %53 }
  0x87   :  { %v65_v20 = vmul.f32 %v64_v18, %v54_v19 }
  0x89   :  { %v67_v21 = vadd.f32 1e-06, %v65_v20 }
  0x8b   :  { %138 = vrsqrt.f32 %v67_v21  ;;  %vm75_vm2 = vweird.f32 %v67_v21 }
  0x8e   :  { %v57_v22 = vpop.xlane.xlu0 %56 }
  0x8f   :  { %v66_v23 = vmul.f32 %v64_v18, %v57_v22 }
  0x91   :  { %v139_v25 = vpop.eup %138  ;;  %v68_v26 = vadd.f32 1e-06, %v66_v23 }
  0x92   :  { %v70_v27 = vmul.f32 %v139_v25, %v67_v21  ;;  %vm76_vm1 = vweird.f32 %v139_v25 }
  0x93   :  { %140 = vrsqrt.f32 %v68_v26  ;;  %vm77_vm3 = vmor %vm75_vm2, %vm76_vm1  ;;  %vm85_vm5 = vweird.f32 %v68_v26 }
  0x94   :  { %v71_v29 = vmul.f32 %v139_v25, %v70_v27 }
  0x96   :  { %v72_v30 = vmul.f32 0.5, %v71_v29 }
  0x98   :  { %v73_v33 = vsub.f32 1.5, %v72_v30 }
  0x99   :  { %v141_v34 = vpop.eup %140 }
  0x9a   :  { %v74_v35 = vmul.f32 %v139_v25, %v73_v33  ;;  %v80_v36 = vmul.f32 %v141_v34, %v68_v26  ;;  %vm86_vm4 = vweird.f32 %v141_v34 }
  0x9b   :  { %vm87_vm6 = vmor %vm85_vm5, %vm86_vm4 }
  0x9c   :  { %v78_v39 = vsel %vm77_vm3, %v139_v25, %v74_v35  ;;  %v81_v40 = vmul.f32 %v141_v34, %v80_v36 }
  0x9d   :  { %v89_v41 = vmul.f32 %v78_v39, %v44_v2  ;;  %v90_v42 = vmul.f32 %v78_v39, %v45_v3 }
  0x9e   :  { %v82_v43 = vmul.f32 0.5, %v81_v40 }
  0x9f   :  { %v102_v44 = vmul.f32 %v100_v37, %v89_v41  ;;  %v103_v45 = vmul.f32 %v101_v38, %v90_v42 }
  0xa0   :  { %v83_v46 = vsub.f32 1.5, %v82_v43 }
  0xa1   :  { %v106_v47 = vpack.c.bf16 %v103_v45, %v102_v44 }
  0xa2   :  { %v84_v48 = vmul.f32 %v141_v34, %v83_v46 }
  0xa3   :  { %108 = vst [vmem:[#allocation7] sm:$0xff] %v106_v47 }
  0xa4   :  { %v88_v49 = vsel %vm87_vm6, %v141_v34, %v84_v48 }
  0xa5   :  { %v91_v50 = vmul.f32 %v88_v49, %v46_v6  ;;  %v92_v51 = vmul.f32 %v88_v49, %v47_v7 }
  0xa7   :  { %v104_v52 = vmul.f32 %v100_v37, %v91_v50  ;;  %v105_v53 = vmul.f32 %v101_v38, %v92_v51 }
  0xa9   :  { %v107_v54 = vpack.c.bf16 %v105_v53, %v104_v52 }
  0xab   :  { %109 = vst [vmem:[#allocation7 + $0x8] sm:$0xff] %v107_v54 }
  0xac   :  { %122 = dma.vmem_to_hbm [thread:$0]  %s115_s1, 256, %s117_s23, [#allocation4], %s221_s17, %s221_s17, %s222_s18  }
  0xad   :  { %218 = dma.done.wait [#allocation4], 256  }
  0xae   :  { %219 = vsyncadd [#allocation4], 4294967040 }
  0xaf   :  { %127 = vsyncpa [#allocation3], 1 }
  0xb0   :  { %128 = vsyncpa [#allocation6], 1 }
  0xb1   :  { %129 = vsyncpa [#allocation4], 1 }

</bundles_post_ra>
